<compile_context>
chip_gen: v5e
topology: v5e:2x2
jax: 0.10.0
libtpu: 0.0.40
codegen_flags: <defaults>
</compile_context>

<pallas_src>
import functools
import math

import jax
import jax.numpy as jnp
from jax.experimental import pallas as pl
from jax.experimental.pallas import tpu as pltpu


def _outconv_kernel(x_ref, w_ref, b_ref, o_ref, *, tb):
    """One grid step: (tb, C_in, TH) slab -> (tb, C_out, TH) slab."""
    w = w_ref[...]                                     # (C_out, C_in)
    c_out, th = o_ref.shape[-2], o_ref.shape[-1]
    # Hoisted bias broadcast: doing `+ bias` with a (C_out, 1) operand inside
    # the unrolled loop would emit tb separate broadcast_in_dim ops.
    bias = jnp.broadcast_to(b_ref[...], (c_out, th))   # (C_out, TH), f32
    # tb is small and static -> unrolled; each iteration is one MXU matmul
    # with a lane-dense (C_in, TH) RHS and a single full-width store.
    for t in range(tb):
        o_ref[t] = (jnp.dot(w, x_ref[t], preferred_element_type=jnp.float32)
                    + bias).astype(o_ref.dtype)


def _largest_divisor_leq(n, cap):
    cap = max(1, min(cap, n))
    for d in range(cap, 0, -1):
        if n % d == 0:
            return d
    return 1


def _pick_tiles(B, C_in, C_out, H, itemsize,
                budget_bytes=24 << 20,      # double-buffered x+out data budget
                max_tb=32,                  # unroll cap on batch rows / step
                min_split_bytes=2 << 20):   # only force >=2 steps above this
    """Choose (tb, th) so slabs are lane-dense, large, and VMEM-safe."""
    # Bytes through VMEM per (batch row, lane element): x + out, double-buffered.
    per_elem = 2 * (C_in + C_out) * itemsize

    # th: largest divisor of H that is a multiple of 128 (lane-dense stores)
    # and fits the budget at tb=1.  If H has no multiple-of-128 divisor, fall
    # back to the full extent (allowed by the (8,128) BlockSpec rule).
    ths = [d for d in range(128, H + 1, 128) if H % d == 0]
    if not ths:
        ths = [H]
    fitting = [t for t in ths if t * per_elem <= budget_bytes]
    th = max(fitting) if fitting else min(ths)

    # tb: as many batch rows as still fit the budget (capped for unrolling).
    tb = _largest_divisor_leq(B, min(max_tb, max(1, budget_bytes // (th * per_elem))))

    # Megacore: if everything collapsed into a single grid step but each half
    # would still be a healthy slab, split so both v7x TensorCores get work.
    if (B // tb) * (H // th) == 1 and tb * th * per_elem >= 2 * min_split_bytes:
        if tb > 1:
            tb = _largest_divisor_leq(B, tb // 2)
        elif th % 256 == 0 and H % (th // 2) == 0:
            th //= 2
    return tb, th


def out_conv(x, weight, bias, *, tb=None, th=None, bf16=False):
    """Forward pass of OutConv (nn.Conv1d with kernel_size=1).

    x:      (B, C_in, H)
    weight: (C_out, C_in, 1)   (PyTorch Conv1d layout)
    bias:   (C_out,)
    returns (B, C_out, H)
    """
    B, C_in, H = x.shape
    C_out = weight.shape[0]

    if bf16:
        # Optional: kernel is HBM-bound, halving bytes moved ~2x win.
        # Accumulation stays f32 via preferred_element_type.
        x = x.astype(jnp.bfloat16)
        weight = weight.astype(jnp.bfloat16)

    out_dtype = x.dtype
    itemsize = jnp.dtype(x.dtype).itemsize

    auto_tb, auto_th = _pick_tiles(B, C_in, C_out, H, itemsize)
    if tb is None:
        tb = auto_tb
    tb = _largest_divisor_leq(B, tb)
    if th is None:
        th = auto_th
    if (H % th != 0) or (th != H and th % 128 != 0):
        th = auto_th

    w2 = weight.reshape(C_out, C_in)                 # drop the kernel_size=1 axis
    b2 = bias.reshape(C_out, 1).astype(jnp.float32)  # f32 add onto the f32 acc

    grid = (B // tb, H // th)
    kernel = functools.partial(_outconv_kernel, tb=tb)

    # Scoped-VMEM bookkeeping: double-buffered x+out slabs + weight/bias + margin.
    needed = (2 * tb * th * (C_in + C_out) * itemsize
              + 2 * (C_out * C_in + C_out) * 4
              + (2 << 20))
    compiler_kwargs = dict(dimension_semantics=("parallel", "parallel"))
    if needed > (14 << 20):
        # Would exceed v5e's 16 MiB default scoped VMEM; raise explicitly.
        # Clamp at 48 MiB which still leaves headroom on v7x (64 MiB physical).
        compiler_kwargs["vmem_limit_bytes"] = int(min(max(needed, 32 << 20), 48 << 20))

    return pl.pallas_call(
        kernel,
        out_shape=jax.ShapeDtypeStruct((B, C_out, H), out_dtype),
        grid=grid,
        in_specs=[
            pl.BlockSpec((tb, C_in, th), lambda i, j: (i, 0, j)),   # x slab (lane-dense)
            pl.BlockSpec((C_out, C_in), lambda i, j: (0, 0)),       # weight (resident)
            pl.BlockSpec((C_out, 1), lambda i, j: (0, 0)),          # bias   (resident)
        ],
        out_specs=pl.BlockSpec((tb, C_out, th), lambda i, j: (i, 0, j)),
        compiler_params=pltpu.CompilerParams(**compiler_kwargs),
    )(x, w2, b2)


# ----------------------- deterministic parameter setup -----------------------
def init_params(key, c_in, c_out):
    """Mirror nn.Conv1d(kernel_size=1) default init: U(-1/sqrt(C_in), +)."""
    kw, kb = jax.random.split(key)
    s = 1.0 / math.sqrt(c_in)
    weight = jax.random.uniform(kw, (c_out, c_in, 1), jnp.float32, -s, s)
    bias = jax.random.uniform(kb, (c_out,), jnp.float32, -s, s)
    return weight, bias


# --------------------- pure-JAX reference (mirrors torch) --------------------
def ref_forward(x, weight, bias):
    w2 = weight.reshape(weight.shape[0], weight.shape[1])
    return jnp.einsum('oc,bch->boh', w2, x) + bias[None, :, None]


if __name__ == "__main__":
    # Small shapes consistent with the LSM-1D module (width=32 channels in,
    # a few output channels, lane-dense spatial extent).
    B, C_IN, C_OUT, H = 2, 32, 8, 256

    key = jax.random.PRNGKey(0)
    kx, kp = jax.random.split(key)
    x = jax.random.normal(kx, (B, C_IN, H), jnp.float32)
    weight, bias = init_params(kp, C_IN, C_OUT)

    y = out_conv(x, weight, bias)
    y = jax.block_until_ready(y)

    y_ref = ref_forward(x, weight, bias)
    err = float(jnp.max(jnp.abs(y - y_ref)))
    assert jnp.allclose(y, y_ref, atol=1e-5, rtol=1e-5), f"max abs err {err}"

    # Exercise a non-trivial tiling path (multiple grid steps, divisor search).
    B2, H2 = 4, 1024
    x2 = jax.random.normal(kx, (B2, C_IN, H2), jnp.float32)
    y2 = jax.block_until_ready(out_conv(x2, weight, bias, tb=2, th=512))
    y2_ref = ref_forward(x2, weight, bias)
    assert jnp.allclose(y2, y2_ref, atol=1e-5, rtol=1e-5)

    print("KERNEL_OK")
</pallas_src>

<mosaic_0001>
module attributes {stable_mosaic.version = 11 : i64} {
  func.func @_outconv_kernel(%arg0: i32, %arg1: i32, %arg2: memref<2x32x256xf32, #tpu.memory_space<vmem>>, %arg3: memref<8x32xf32, #tpu.memory_space<vmem>>, %arg4: memref<8x1xf32, #tpu.memory_space<vmem>>, %arg5: memref<2x8x256xf32, #tpu.memory_space<vmem>>) attributes {dimension_semantics = [#tpu.dimension_semantics<parallel>, #tpu.dimension_semantics<parallel>], iteration_bounds = array<i64: 1, 1>, scalar_prefetch = 0 : i64, scratch_operands = 0 : i64, tpu.core_type = #tpu.core_type<tc>, window_params = [{transform_indices = @transform_0, window_bounds = array<i64: 2, 32, 256>}, {pipeline_mode = #tpu.pipeline_mode<synchronous>, transform_indices = @transform_1, window_bounds = array<i64: 8, 32>}, {pipeline_mode = #tpu.pipeline_mode<synchronous>, transform_indices = @transform_2, window_bounds = array<i64: 8, 1>}, {transform_indices = @transform_3, window_bounds = array<i64: 2, 8, 256>}]} {
    %c0 = arith.constant 0 : index
    %c0_0 = arith.constant 0 : index
    %0 = vector.load %arg3[%c0, %c0_0] : memref<8x32xf32, #tpu.memory_space<vmem>>, vector<8x32xf32>
    %c0_1 = arith.constant 0 : index
    %c0_2 = arith.constant 0 : index
    %1 = vector.load %arg4[%c0_1, %c0_2] : memref<8x1xf32, #tpu.memory_space<vmem>>, vector<8x1xf32>
    %2 = vector.shape_cast %1 : vector<8x1xf32> to vector<8x1xf32>
    %3 = vector.broadcast %2 : vector<8x1xf32> to vector<8x256xf32>
    %c0_3 = arith.constant 0 : index
    %c0_4 = arith.constant 0 : index
    %c0_5 = arith.constant 0 : index
    %4 = vector.load %arg2[%c0_3, %c0_4, %c0_5] : memref<2x32x256xf32, #tpu.memory_space<vmem>>, vector<1x32x256xf32>
    %5 = vector.shape_cast %4 : vector<1x32x256xf32> to vector<32x256xf32>
    %cst = arith.constant dense<0.000000e+00> : vector<8x256xf32>
    %6 = tpu.matmul %0, %5, %cst {dimension_numbers = #tpu.dot_dimension_numbers<[1], [0], [0], [1], [0, 0, 1, 1], [], []>} : vector<8x32xf32>, vector<32x256xf32>, vector<8x256xf32> -> vector<8x256xf32>
    %7 = arith.addf %6, %3 : vector<8x256xf32>
    %c0_6 = arith.constant 0 : index
    %c0_7 = arith.constant 0 : index
    %c0_8 = arith.constant 0 : index
    %8 = vector.load %arg5[%c0_6, %c0_7, %c0_8] : memref<2x8x256xf32, #tpu.memory_space<vmem>>, vector<1x8x256xf32>
    %9 = vector.shape_cast %8 : vector<1x8x256xf32> to vector<8x256xf32>
    %10 = vector.shape_cast %7 : vector<8x256xf32> to vector<1x8x256xf32>
    tpu.vector_store %arg5[%c0_6, %c0_7, %c0_8], %10 {strides = array<i32>} : memref<2x8x256xf32, #tpu.memory_space<vmem>>, vector<1x8x256xf32>,
    %c1 = arith.constant 1 : index
    %c0_9 = arith.constant 0 : index
    %c0_10 = arith.constant 0 : index
    %11 = vector.load %arg2[%c1, %c0_9, %c0_10] : memref<2x32x256xf32, #tpu.memory_space<vmem>>, vector<1x32x256xf32>
    %12 = vector.shape_cast %11 : vector<1x32x256xf32> to vector<32x256xf32>
    %cst_11 = arith.constant dense<0.000000e+00> : vector<8x256xf32>
    %13 = tpu.matmul %0, %12, %cst_11 {dimension_numbers = #tpu.dot_dimension_numbers<[1], [0], [0], [1], [0, 0, 1, 1], [], []>} : vector<8x32xf32>, vector<32x256xf32>, vector<8x256xf32> -> vector<8x256xf32>
    %14 = arith.addf %13, %3 : vector<8x256xf32>
    %c1_12 = arith.constant 1 : index
    %c0_13 = arith.constant 0 : index
    %c0_14 = arith.constant 0 : index
    %15 = vector.load %arg5[%c1_12, %c0_13, %c0_14] : memref<2x8x256xf32, #tpu.memory_space<vmem>>, vector<1x8x256xf32>
    %16 = vector.shape_cast %15 : vector<1x8x256xf32> to vector<8x256xf32>
    %17 = vector.shape_cast %14 : vector<8x256xf32> to vector<1x8x256xf32>
    tpu.vector_store %arg5[%c1_12, %c0_13, %c0_14], %17 {strides = array<i32>} : memref<2x8x256xf32, #tpu.memory_space<vmem>>, vector<1x8x256xf32>,
    return
  }
  func.func @transform_0(%arg0: i32, %arg1: i32) -> (i32, i32, i32) {
    %c0_i32 = arith.constant 0 : i32
    %c0_i32_0 = arith.constant 0 : i32
    return %arg0, %c0_i32, %arg1 : i32, i32, i32
  }
  func.func @transform_1(%arg0: i32, %arg1: i32) -> (i32, i32) {
    %c0_i32 = arith.constant 0 : i32
    %c0_i32_0 = arith.constant 0 : i32
    %c0_i32_1 = arith.constant 0 : i32
    return %c0_i32, %c0_i32_0 : i32, i32
  }
  func.func @transform_2(%arg0: i32, %arg1: i32) -> (i32, i32) {
    %c0_i32 = arith.constant 0 : i32
    %c0_i32_0 = arith.constant 0 : i32
    %c0_i32_1 = arith.constant 0 : i32
    return %c0_i32, %c0_i32_0 : i32, i32
  }
  func.func @transform_3(%arg0: i32, %arg1: i32) -> (i32, i32, i32) {
    %c0_i32 = arith.constant 0 : i32
    %c0_i32_0 = arith.constant 0 : i32
    return %arg0, %c0_i32, %arg1 : i32, i32, i32
  }
}

</mosaic_0001>

<bundles_post_ra>
// kernel: tpu_custom_call.1
= control target key start
LH: loop header
LB: loop body
LE: loop exit
PB: predicated region body
PF: predicated region fallthrough
CT: control target
= control target key end

     0   :  { %8 = vsyncpa [#allocation3], 0  ;;  %s272_s0 = inlined_call_operand.hbm [shape: f32[2,32,256], index: 0, kind: input, shape index: {}]   ;;  %s273_s1 = inlined_call_operand.vmem [shape: f32[8,32], index: 1, kind: input, shape index: {}]   ;;  %s274_s2 = inlined_call_operand.vmem [shape: f32[8,1], index: 2, kind: input, shape index: {}]   ;;  %s275_s3 = inlined_call_operand.hbm [shape: f32[2,8,256], index: 3, kind: output, shape index: {}]  }
   0x1   :  { %9 = vsyncpa [#allocation4], 0  ;;  %s14_s14 = sshll.u32 %s272_s0, 4  ;;  %s225_s15 = smov [#allocation2]   ;;  %s15_s14 = int_to_ptr.hbm [resolvable:$true] %s14_s14 }
   0x2   :  { %s16_s16 = sshll.u32 %s225_s15, 4  ;;  %s226_s17 = smov 256   ;;  %s17_s16 = int_to_ptr.vmem [resolvable:$true] %s16_s16 }
   0x3   :  { %s227_s18 = smov 16  }
   0x4   :  { %22 = dma.hbm_to_vmem [thread:$0]  %s15_s14, 2048, %s17_s16, [#allocation3], %s226_s17, %s226_s17, %s227_s18  }
   0x5   :  { %221 = dma.done.wait [#allocation3], 2048  }
   0x6   :  { %222 = vsyncadd [#allocation3], 4294965248  ;;  %v228_v0 = vmov 0   ;;  %v99_v1 = vld [vmem:[#allocation2 + $0x70] sm:$0xff]  ;;  %v100_v2 = vld [vmem:[#allocation2 + $0x78] sm:$0xff]  ;;  %vm46_vm0 = vcmask 261120  }
   0x7   :  { %172 = vset.pattern.permute.xlu0 %v228_v0  ;;  %v97_v3 = vld [vmem:[#allocation2 + $0x60] sm:$0xff]  ;;  %113 = vmatpush.msra.mxu2 %v99_v1  ;;  %v98_v4 = vld [vmem:[#allocation2 + $0x68] sm:$0xff]  ;;  %v95_v5 = vld [vmem:[#allocation2 + $0x50] sm:$0xff]  ;;  %s150_s24 = sshll.u32 %s275_s3, 4  ;;  %s151_s24 = int_to_ptr.hbm [resolvable:$true] %s150_s24 }
   0x8   :  { %133 = vmatpush.msra.mxu3 %v100_v2  ;;  %v96_v6 = vld [vmem:[#allocation2 + $0x58] sm:$0xff]  ;;  %v44_v7 = vld [vmem:[#allocation2 + $0x30] sm:$0xff]  ;;  %v42_v9 = vld [vmem:[#allocation2 + $0x20] sm:$0xff] }
   0x9   :  { %v45_v8 = vld [vmem:[#allocation2 + $0x38] sm:$0xff]  ;;  %114 = vmatpush.msra.mxu2 %v97_v3  ;;  %62 = vmatpush.msra.mxu0 %v44_v7  ;;  %v93_v10 = vld [vmem:[#allocation2 + $0x40] sm:$0xff]  ;;  %v94_v11 = vld [vmem:[#allocation2 + $0x48] sm:$0xff] }
   0xa   :  { %134 = vmatpush.msra.mxu3 %v98_v4  ;;  %82 = vmatpush.msra.mxu1 %v45_v8  ;;  %v43_v12 = vld [vmem:[#allocation2 + $0x28] sm:$0xff]  ;;  %v31_v13 = vld [vmem:[%s273_s1] sm:$0xff]  ;;  %v40_v14 = vld [vmem:[#allocation2 + $0x10] sm:$0xff]  ;;  %s229_s1 = smov [#allocation5]  }
   0xb   :  { %115 = vmatpush.msra.mxu2 %v95_v5  ;;  %63 = vmatpush.msra.mxu0 %v42_v9  ;;  %v41_v15 = vld [vmem:[#allocation2 + $0x18] sm:$0xff]  ;;  %v32_v16 = vld [vmem:[%s274_s2] sm:$0xff]  ;;  %v39_v18 = vld [vmem:[#allocation2 + $0x8] sm:$0xff]  ;;  %s148_s2 = sshll.u32 %s229_s1, 4  ;;  %s149_s2 = int_to_ptr.vmem [resolvable:$true] %s148_s2 }
   0xc   :  { %135 = vmatpush.msra.mxu3 %v96_v6  ;;  %83 = vmatpush.msra.mxu1 %v43_v12  ;;  %v38_v17 = vld [vmem:[#allocation2] sm:$0xff] }
   0xd   :  { %116 = vmatpush.msra.mxu2 %v93_v10  ;;  %64 = vmatpush.msra.mxu0 %v40_v14 }
   0xe   :  { %136 = vmatpush.msra.mxu3 %v94_v11  ;;  %165 = vmatmul.msk.f32.vlgmr.msra.gmra.mxu2 %vm46_vm0, %v31_v13 }
   0xf   :  { %166 = vmatmul.msk.f32.vlgmr.msra.gmra.mxu3 %vm46_vm0, %v31_v13  ;;  %84 = vmatpush.msra.mxu1 %v41_v15 }
  0x10   :  { %35 = vperm.xlu0 %172, %v32_v16   ;;  %65 = vmatpush.msra.mxu0 %v38_v17 }
  0x11   :  { %85 = vmatpush.msra.mxu1 %v39_v18  ;;  %163 = vmatmul.msk.f32.vlgmr.msra.gmra.mxu0 %vm46_vm0, %v31_v13 }
  0x12   :  { %164 = vmatmul.msk.f32.vlgmr.msra.gmra.mxu1 %vm46_vm0, %v31_v13 }
  0x82   :  { %v36_v19 = vpop.permute.xlu0 %35 }
  0x8e   :  { %v67_v20 = vpop.f32.mrf.mxu0 }
  0x8f   :  { %v87_v21 = vpop.f32.mrf.mxu1  ;;  %v68_v22 = vadd.f32 %v67_v20, %v36_v19 }
  0x90   :  { %v88_v23 = vadd.f32 %v87_v21, %v36_v19 }
  0x91   :  { %v118_v24 = vpop.f32.mrf.mxu2  ;;  %90 = vst [vmem:[#allocation5] sm:$0xff] %v68_v22 }
  0x92   :  { %v138_v25 = vpop.f32.mrf.mxu3  ;;  %v119_v26 = vadd.f32 %v118_v24, %v36_v19  ;;  %91 = vst [vmem:[#allocation5 + $0x8] sm:$0xff] %v88_v23 }
  0x93   :  { %v139_v27 = vadd.f32 %v138_v25, %v36_v19 }
  0x94   :  { %142 = vst [vmem:[#allocation5 + $0x10] sm:$0xff] %v119_v26 }
  0x95   :  { %143 = vst [vmem:[#allocation5 + $0x18] sm:$0xff] %v139_v27 }
  0x96   :  { %156 = dma.vmem_to_hbm [thread:$0]  %s149_s2, 512, %s151_s24, [#allocation4], %s226_s17, %s226_s17, %s227_s18  }
  0x97   :  { %223 = dma.done.wait [#allocation4], 512  }
  0x98   :  { %224 = vsyncadd [#allocation4], 4294966784 }
  0x99   :  { %161 = vsyncpa [#allocation3], 1 }
  0x9a   :  { %162 = vsyncpa [#allocation4], 1 }

</bundles_post_ra>
